<compile_context>
chip_gen: v6e
topology: v6e:2x2x1
jax: 0.10.0
libtpu: 0.0.40
codegen_flags: <defaults>
</compile_context>

<pallas_src>
import jax
import jax.numpy as jnp
from jax.experimental import pallas as pl
from jax.experimental.pallas import tpu as pltpu


# --------------------------- small helpers -----------------------------------


def _sigmoid(x):
    # Numerically stable logistic built only from ops with guaranteed Mosaic
    # lowering (exp -> EUP slot, one divide, one select). No inf intermediate.
    # (Exact divide is kept instead of pl.reciprocal(approx=True) so the f32
    # tolerance check against the reference stays tight.)
    z = jnp.exp(-jnp.abs(x))
    inv = 1.0 / (1.0 + z)
    return jnp.where(x >= 0, inv, z * inv)


_SINGLE_BUFFER_OK = None


def _probe_single_buffering():
    """Check once whether pl.Buffered(1) is accepted by this JAX/Mosaic build."""
    if not hasattr(pl, "Buffered"):
        return False
    try:
        def _k(x_ref, o_ref):
            o_ref[...] = x_ref[...] + 1.0

        spec = pl.BlockSpec((8, 128), lambda i: (0, 0),
                            pipeline_mode=pl.Buffered(1))
        out = pl.pallas_call(
            _k,
            out_shape=jax.ShapeDtypeStruct((8, 128), jnp.float32),
            grid=(2,),
            in_specs=[spec],
            out_specs=pl.BlockSpec((8, 128), lambda i: (0, 0)),
        )(jnp.zeros((8, 128), jnp.float32))
        jax.block_until_ready(out)
        return True
    except Exception:
        return False


def _const_spec_for(arr):
    """BlockSpec for a block that is identical at every grid step.

    Single-buffering halves its resident VMEM footprint (weights dominate VMEM
    for large D); falls back to the default double-buffered spec if needed.
    """
    global _SINGLE_BUFFER_OK
    if _SINGLE_BUFFER_OK is None:
        _SINGLE_BUFFER_OK = _probe_single_buffering()
    nd = arr.ndim
    index_map = lambda *_: (0,) * nd
    if _SINGLE_BUFFER_OK:
        return pl.BlockSpec(arr.shape, index_map, pipeline_mode=pl.Buffered(1))
    return pl.BlockSpec(arr.shape, index_map)


def _vmem_limit_bytes():
    """Scoped-VMEM limit: ~3/4 of physical VMEM, capped at 96 MiB.

    Conservative 64 MiB fallback (v7x-sized) if the hardware query fails.
    """
    try:
        info = pltpu.get_tpu_info()
        cap = int(getattr(info, "vmem_capacity_bytes", 0)) or (64 << 20)
    except Exception:
        cap = 64 << 20
    return int(min(cap * 3 // 4, 96 << 20))


def _pick_block_b(B, D, itemsize, vmem_limit, block_b=None):
    """Batch tile size: as large as the VMEM budget allows, but >=4 grid steps
    for large batches so both v7x TensorCores get work and DMA overlaps compute."""
    if block_b is None:
        # Per batch row: s, h, out double-buffered in storage dtype plus ~10
        # live f32 (bt, D) temporaries in the kernel body.  The other half of
        # the budget holds the resident (single-buffered) weights + slack.
        per_row = 6 * D * itemsize + 10 * D * 4
        block_b = (vmem_limit // 2) // max(per_row, 1)
        block_b = min(block_b, 1024)
        if B >= 32:
            block_b = min(block_b, ((pl.cdiv(B, 4) + 7) // 8) * 8)
    if block_b >= B:
        return B                      # single full-batch block (block == array dim)
    return max(8, (block_b // 8) * 8)  # sublane-aligned partial block


# ----------------------------- GRU cell ---------------------------------------
# PyTorch nn.GRUCell semantics with input=s, hidden=h (as RecurrentMemoryCell does):
#   r = sig(W_ir s + b_ir + W_hr h + b_hr)
#   z = sig(W_iz s + b_iz + W_hz h + b_hz)
#   n = tanh(W_in s + b_in + r * (W_hn h + b_hn))
#   h' = (1 - z) * n + z * h


def _gru_fused_kernel(s_ref, h_ref, wi_ref, wh_ref, bi_ref, bhn_ref, o_ref):
    # s,h,o: (Bt, D); wi,wh: (D, 3D) gate blocks [r|z|n] along lanes;
    # bi: (1, 3D) = [b_ir+b_hr | b_iz+b_hz | b_in]; bhn: (1, D).
    f32 = jnp.float32
    D = h_ref.shape[-1]
    s = s_ref[...]
    h = h_ref[...]
    a = jnp.dot(s, wi_ref[...], preferred_element_type=f32) + bi_ref[...]
    g = jnp.dot(h, wh_ref[...], preferred_element_type=f32)
    r = _sigmoid(a[:, :D] + g[:, :D])
    z = _sigmoid(a[:, D:2 * D] + g[:, D:2 * D])
    n = jnp.tanh(a[:, 2 * D:] + r * (g[:, 2 * D:] + bhn_ref[...]))
    h32 = h.astype(f32)
    o_ref[...] = (n + z * (h32 - n)).astype(o_ref.dtype)   # == (1-z)*n + z*h


def _gru_split_kernel(s_ref, h_ref, wi_ref, wh_ref, bi_ref, bhn_ref, o_ref):
    # Fallback for D % 128 != 0: per-gate (D, D) weights avoid intra-vreg slicing.
    # wi,wh: (3, D, D); bi: (3, 1, D) = [b_ir+b_hr, b_iz+b_hz, b_in]; bhn: (1, D).
    f32 = jnp.float32
    s = s_ref[...]
    h = h_ref[...]
    r = _sigmoid(jnp.dot(s, wi_ref[0], preferred_element_type=f32)
                 + jnp.dot(h, wh_ref[0], preferred_element_type=f32) + bi_ref[0])
    z = _sigmoid(jnp.dot(s, wi_ref[1], preferred_element_type=f32)
                 + jnp.dot(h, wh_ref[1], preferred_element_type=f32) + bi_ref[1])
    ghn = jnp.dot(h, wh_ref[2], preferred_element_type=f32) + bhn_ref[...]
    n = jnp.tanh(jnp.dot(s, wi_ref[2], preferred_element_type=f32)
                 + bi_ref[2] + r * ghn)
    h32 = h.astype(f32)
    o_ref[...] = (n + z * (h32 - n)).astype(o_ref.dtype)


def prepare_gru_params(weight_ih, weight_hh, bias_ih, bias_hh, *, dtype=None):
    """One-time repack of PyTorch nn.GRUCell params (weight_* is (3D, D), [r|z|n]).

    Call ONCE per parameter set, not per timestep: in a recurrence the transpose
    and stack would otherwise re-materialize in HBM every step.  Pass
    dtype=jnp.bfloat16 for bf16 storage (recommended on v5e); gating math stays f32.
    """
    D = weight_ih.shape[1]
    dt = dtype or weight_ih.dtype
    fused = (D % 128 == 0)

    b_ih = bias_ih.astype(jnp.float32)
    b_hh = bias_hh.astype(jnp.float32)
    # Pre-sum r/z biases; keep the hidden-side n bias separate (r multiplies it).
    bi = jnp.concatenate([b_ih[:2 * D] + b_hh[:2 * D], b_ih[2 * D:]])
    bhn = b_hh[2 * D:].reshape(1, D)

    if fused:
        wi = weight_ih.T.astype(dt)                                   # (D, 3D)
        wh = weight_hh.T.astype(dt)                                   # (D, 3D)
        bi = bi.reshape(1, 3 * D)
    else:
        wi = jnp.transpose(weight_ih.reshape(3, D, D), (0, 2, 1)).astype(dt)
        wh = jnp.transpose(weight_hh.reshape(3, D, D), (0, 2, 1)).astype(dt)
        bi = bi.reshape(3, 1, D)
    return dict(kind="gru", fused=fused, D=D, wi=wi, wh=wh, bi=bi, bhn=bhn)


def gru_memory_cell(h, s, params, *, block_b=None):
    B, D = h.shape
    dt = h.dtype
    vmem_limit = _vmem_limit_bytes()
    bt = _pick_block_b(B, D, jnp.dtype(dt).itemsize, vmem_limit, block_b)
    grid = (pl.cdiv(B, bt),)

    row_spec = pl.BlockSpec((bt, D), lambda b: (b, 0))
    wi, wh, bi, bhn = params["wi"], params["wh"], params["bi"], params["bhn"]
    kernel = _gru_fused_kernel if params["fused"] else _gru_split_kernel

    return pl.pallas_call(
        kernel,
        out_shape=jax.ShapeDtypeStruct((B, D), dt),
        grid_spec=pltpu.PrefetchScalarGridSpec(
            num_scalar_prefetch=0,
            grid=grid,
            in_specs=[row_spec, row_spec,
                      _const_spec_for(wi), _const_spec_for(wh),
                      _const_spec_for(bi), _const_spec_for(bhn)],
            out_specs=row_spec,
        ),
        compiler_params=pltpu.CompilerParams(
            dimension_semantics=("parallel",),
            vmem_limit_bytes=vmem_limit),
        input_output_aliases={1: 0},   # donate h's HBM buffer to new_h
    )(s, h, wi, wh, bi, bhn)


# -------------------------- Minimal RNN cell -----------------------------------
#   [gate|cand] = Linear(2D->2D)(cat[h, s]);  new_h = h*sig(gate) + (1-sig(gate))*siglu(cand)


def _minimal_fused_kernel(h_ref, s_ref, wh_ref, ws_ref, b_ref, o_ref):
    # h,s,o: (Bt, D); wh,ws: (D, 2D) with output blocks [gate|cand]; b: (1, 2D).
    f32 = jnp.float32
    D = h_ref.shape[-1]
    h = h_ref[...]
    s = s_ref[...]
    u = (jnp.dot(h, wh_ref[...], preferred_element_type=f32)
         + jnp.dot(s, ws_ref[...], preferred_element_type=f32)
         + b_ref[...])
    gate = _sigmoid(u[:, :D])
    cand = u[:, D:]
    cand = cand * _sigmoid(cand)          # siglu(x) = x * sigmoid(x)
    h32 = h.astype(f32)
    o_ref[...] = (cand + gate * (h32 - cand)).astype(o_ref.dtype)   # == h*g + (1-g)*cand


def _minimal_split_kernel(h_ref, s_ref, w_ref, b_ref, o_ref):
    # Fallback for D % 128 != 0.
    # w: (4, D, D): [h->gate, s->gate, h->cand, s->cand]; b: (2, 1, D).
    f32 = jnp.float32
    h = h_ref[...]
    s = s_ref[...]
    gate = _sigmoid(jnp.dot(h, w_ref[0], preferred_element_type=f32)
                    + jnp.dot(s, w_ref[1], preferred_element_type=f32) + b_ref[0])
    cand = (jnp.dot(h, w_ref[2], preferred_element_type=f32)
            + jnp.dot(s, w_ref[3], preferred_element_type=f32) + b_ref[1])
    cand = cand * _sigmoid(cand)
    h32 = h.astype(f32)
    o_ref[...] = (cand + gate * (h32 - cand)).astype(o_ref.dtype)


def prepare_minimal_params(weight, bias, *, dtype=None):
    """One-time repack of MinimalRNNCell's nn.Linear(2D, 2D) params."""
    D = weight.shape[1] // 2
    dt = dtype or weight.dtype
    fused = (D % 128 == 0)
    wt = weight.T                     # (2D, 2D): rows 0:D multiply h, D:2D multiply s;
    b = bias.astype(jnp.float32)      #            cols 0:D -> gate, D:2D -> candidate
    if fused:
        return dict(kind="minimal", fused=True, D=D,
                    wh=wt[:D, :].astype(dt),      # (D, 2D): h -> [gate|cand]
                    ws=wt[D:, :].astype(dt),      # (D, 2D): s -> [gate|cand]
                    b=b.reshape(1, 2 * D))
    w = jnp.stack([wt[:D, :D], wt[D:, :D], wt[:D, D:], wt[D:, D:]], 0).astype(dt)
    b2 = jnp.stack([b[:D], b[D:]], 0).reshape(2, 1, D)
    return dict(kind="minimal", fused=False, D=D, w=w, b=b2)


def minimal_memory_cell(h, s, params, *, block_b=None):
    B, D = h.shape
    dt = h.dtype
    vmem_limit = _vmem_limit_bytes()
    bt = _pick_block_b(B, D, jnp.dtype(dt).itemsize, vmem_limit, block_b)
    grid = (pl.cdiv(B, bt),)

    row_spec = pl.BlockSpec((bt, D), lambda b: (b, 0))
    cp = pltpu.CompilerParams(dimension_semantics=("parallel",),
                              vmem_limit_bytes=vmem_limit)

    if params["fused"]:
        wh, ws, b = params["wh"], params["ws"], params["b"]
        return pl.pallas_call(
            _minimal_fused_kernel,
            out_shape=jax.ShapeDtypeStruct((B, D), dt),
            grid_spec=pltpu.PrefetchScalarGridSpec(
                num_scalar_prefetch=0,
                grid=grid,
                in_specs=[row_spec, row_spec, _const_spec_for(wh),
                          _const_spec_for(ws), _const_spec_for(b)],
                out_specs=row_spec,
            ),
            compiler_params=cp,
            input_output_aliases={0: 0},   # donate h's HBM buffer to new_h
        )(h, s, wh, ws, b)

    w, b = params["w"], params["b"]
    return pl.pallas_call(
        _minimal_split_kernel,
        out_shape=jax.ShapeDtypeStruct((B, D), dt),
        grid_spec=pltpu.PrefetchScalarGridSpec(
            num_scalar_prefetch=0,
            grid=grid,
            in_specs=[row_spec, row_spec, _const_spec_for(w), _const_spec_for(b)],
            out_specs=row_spec,
        ),
        compiler_params=cp,
        input_output_aliases={0: 0},
    )(h, s, w, b)


# ------------------------------ dispatcher ------------------------------------


def recurrent_memory_cell(h, s, prepared_params, *, block_b=None):
    """Mirrors RecurrentMemoryCell.forward.

    `prepared_params` comes from prepare_gru_params / prepare_minimal_params
    (one-time repack). GRU is invoked as cell(s, h) — s is the GRUCell input and
    h the hidden state, matching the PyTorch module.
    """
    kind = prepared_params["kind"]
    if kind == "gru":
        return gru_memory_cell(h, s, prepared_params, block_b=block_b)
    if kind == "minimal":
        return minimal_memory_cell(h, s, prepared_params, block_b=block_b)
    raise ValueError(f"Unsupported cell kind: {kind}")


# ------------------------------ references ------------------------------------


def _gru_reference(h, s, w_ih, w_hh, b_ih, b_hh):
    D = h.shape[-1]
    hp = jax.lax.Precision.HIGHEST
    gi = jnp.dot(s, w_ih.T, precision=hp) + b_ih
    gh = jnp.dot(h, w_hh.T, precision=hp) + b_hh
    r = jax.nn.sigmoid(gi[:, :D] + gh[:, :D])
    z = jax.nn.sigmoid(gi[:, D:2 * D] + gh[:, D:2 * D])
    n = jnp.tanh(gi[:, 2 * D:] + r * gh[:, 2 * D:])
    return (1.0 - z) * n + z * h


def _minimal_reference(h, s, weight, bias):
    D = h.shape[-1]
    hp = jax.lax.Precision.HIGHEST
    combined = jnp.concatenate([h, s], axis=-1)
    update = jnp.dot(combined, weight.T, precision=hp) + bias
    gate = jax.nn.sigmoid(update[:, :D])
    cand = update[:, D:]
    cand = cand * jax.nn.sigmoid(cand)
    return h * gate + (1.0 - gate) * cand


# --------------------------------- demo ----------------------------------------


if __name__ == "__main__":
    def check(name, out, ref, tol):
        assert out.shape == ref.shape, (name, out.shape, ref.shape)
        err = float(jnp.max(jnp.abs(out - ref)))
        assert jnp.allclose(out, ref, atol=tol, rtol=tol), f"{name}: max abs err {err}"

    def run_case(B, D, block_b, tol):
        key = jax.random.fold_in(jax.random.PRNGKey(0), D)
        k = jax.random.split(key, 8)
        h = jax.random.normal(k[0], (B, D), dtype=jnp.float32)
        s = jax.random.normal(k[1], (B, D), dtype=jnp.float32)

        # GRUCell parameters (PyTorch layout: weight_* is (3D, D), gates [r|z|n])
        bound = 1.0 / (D ** 0.5)
        w_ih = jax.random.uniform(k[2], (3 * D, D), minval=-bound, maxval=bound)
        w_hh = jax.random.uniform(k[3], (3 * D, D), minval=-bound, maxval=bound)
        b_ih = jax.random.uniform(k[4], (3 * D,), minval=-bound, maxval=bound)
        b_hh = jax.random.uniform(k[5], (3 * D,), minval=-bound, maxval=bound)

        # MinimalRNNCell parameters (nn.Linear(2D, 2D))
        bound2 = 1.0 / ((2 * D) ** 0.5)
        w_min = jax.random.uniform(k[6], (2 * D, 2 * D), minval=-bound2, maxval=bound2)
        b_min = jax.random.uniform(k[7], (2 * D,), minval=-bound2, maxval=bound2)

        # One-time parameter repack (hoisted out of the per-timestep path).
        gru_params = prepare_gru_params(w_ih, w_hh, b_ih, b_hh)
        min_params = prepare_minimal_params(w_min, b_min)

        out_gru = recurrent_memory_cell(h, s, gru_params, block_b=block_b)
        out_min = recurrent_memory_cell(h, s, min_params, block_b=block_b)
        jax.block_until_ready((out_gru, out_min))

        check(f"gru(B={B},D={D})", out_gru,
              _gru_reference(h, s, w_ih, w_hh, b_ih, b_hh), tol)
        check(f"minimal(B={B},D={D})", out_min,
              _minimal_reference(h, s, w_min, b_min), tol)

    # Small module-consistent shapes (D % 128 != 0 -> per-gate-split kernels).
    run_case(B=2, D=32, block_b=None, tol=1e-4)
    # Lane-dense path (D % 128 == 0 -> fused (D,3D)/(D,2D) weights), 2 grid steps.
    run_case(B=16, D=128, block_b=8, tol=5e-4)

    print("KERNEL_OK")
</pallas_src>

<mosaic_0001>
module attributes {stable_mosaic.version = 11 : i64} {
  func.func @_k(%arg0: i32, %arg1: memref<8x128xf32, #tpu.memory_space<vmem>>, %arg2: memref<8x128xf32, #tpu.memory_space<vmem>>) attributes {dimension_semantics = [#tpu.dimension_semantics<arbitrary>], iteration_bounds = array<i64: 2>, scalar_prefetch = 0 : i64, scratch_operands = 0 : i64, tpu.core_type = #tpu.core_type<tc>, window_params = [{pipeline_mode = #tpu.pipeline_mode<synchronous>, transform_indices = @transform_0, window_bounds = array<i64: 8, 128>}, {pipeline_mode = #tpu.pipeline_mode<synchronous>, transform_indices = @transform_1, window_bounds = array<i64: 8, 128>}]} {
    %c0 = arith.constant 0 : index
    %c0_0 = arith.constant 0 : index
    %0 = vector.load %arg1[%c0, %c0_0] : memref<8x128xf32, #tpu.memory_space<vmem>>, vector<8x128xf32>
    %cst = arith.constant 1.000000e+00 : f32
    %1 = vector.broadcast %cst : f32 to vector<8x128xf32>
    %2 = arith.addf %0, %1 : vector<8x128xf32>
    %c0_1 = arith.constant 0 : index
    %c0_2 = arith.constant 0 : index
    %3 = vector.load %arg2[%c0_1, %c0_2] : memref<8x128xf32, #tpu.memory_space<vmem>>, vector<8x128xf32>
    tpu.vector_store %arg2[%c0_1, %c0_2], %2 {strides = array<i32>} : memref<8x128xf32, #tpu.memory_space<vmem>>, vector<8x128xf32>,
    return
  }
  func.func @transform_0(%arg0: i32) -> (i32, i32) {
    %c0_i32 = arith.constant 0 : i32
    %c0_i32_0 = arith.constant 0 : i32
    %c0_i32_1 = arith.constant 0 : i32
    return %c0_i32, %c0_i32_0 : i32, i32
  }
  func.func @transform_1(%arg0: i32) -> (i32, i32) {
    %c0_i32 = arith.constant 0 : i32
    %c0_i32_0 = arith.constant 0 : i32
    %c0_i32_1 = arith.constant 0 : i32
    return %c0_i32, %c0_i32_0 : i32, i32
  }
}

module attributes {stable_mosaic.version = 11 : i64} {
  func.func @_gru_split_kernel(%arg0: i32, %arg1: memref<2x32xf32, #tpu.memory_space<vmem>>, %arg2: memref<2x32xf32, #tpu.memory_space<vmem>>, %arg3: memref<3x32x32xf32, #tpu.memory_space<vmem>>, %arg4: memref<3x32x32xf32, #tpu.memory_space<vmem>>, %arg5: memref<3x1x32xf32, #tpu.memory_space<vmem>>, %arg6: memref<1x32xf32, #tpu.memory_space<vmem>>, %arg7: memref<2x32xf32, #tpu.memory_space<vmem>>) attributes {dimension_semantics = [#tpu.dimension_semantics<parallel>], iteration_bounds = array<i64: 1>, scalar_prefetch = 0 : i64, scratch_operands = 0 : i64, tpu.core_type = #tpu.core_type<tc>, window_params = [{transform_indices = @transform_0, window_bounds = array<i64: 2, 32>}, {transform_indices = @transform_1, window_bounds = array<i64: 2, 32>}, {pipeline_mode = #tpu.pipeline_mode<synchronous>, transform_indices = @transform_2, window_bounds = array<i64: 3, 32, 32>}, {pipeline_mode = #tpu.pipeline_mode<synchronous>, transform_indices = @transform_3, window_bounds = array<i64: 3, 32, 32>}, {pipeline_mode = #tpu.pipeline_mode<synchronous>, transform_indices = @transform_4, window_bounds = array<i64: 3, 1, 32>}, {pipeline_mode = #tpu.pipeline_mode<synchronous>, transform_indices = @transform_5, window_bounds = array<i64: 1, 32>}, {transform_indices = @transform_6, window_bounds = array<i64: 2, 32>}]} {
    %c0 = arith.constant 0 : index
    %c0_0 = arith.constant 0 : index
    %0 = vector.load %arg1[%c0, %c0_0] : memref<2x32xf32, #tpu.memory_space<vmem>>, vector<2x32xf32>
    %c0_1 = arith.constant 0 : index
    %c0_2 = arith.constant 0 : index
    %1 = vector.load %arg2[%c0_1, %c0_2] : memref<2x32xf32, #tpu.memory_space<vmem>>, vector<2x32xf32>
    %c0_3 = arith.constant 0 : index
    %c0_4 = arith.constant 0 : index
    %c0_5 = arith.constant 0 : index
    %2 = vector.load %arg3[%c0_3, %c0_4, %c0_5] : memref<3x32x32xf32, #tpu.memory_space<vmem>>, vector<1x32x32xf32>
    %3 = vector.shape_cast %2 : vector<1x32x32xf32> to vector<32x32xf32>
    %cst = arith.constant dense<0.000000e+00> : vector<2x32xf32>
    %4 = tpu.matmul %0, %3, %cst {dimension_numbers = #tpu.dot_dimension_numbers<[1], [0], [0], [1], [0, 0, 1, 1], [], []>} : vector<2x32xf32>, vector<32x32xf32>, vector<2x32xf32> -> vector<2x32xf32>
    %c0_6 = arith.constant 0 : index
    %c0_7 = arith.constant 0 : index
    %c0_8 = arith.constant 0 : index
    %5 = vector.load %arg4[%c0_6, %c0_7, %c0_8] : memref<3x32x32xf32, #tpu.memory_space<vmem>>, vector<1x32x32xf32>
    %6 = vector.shape_cast %5 : vector<1x32x32xf32> to vector<32x32xf32>
    %cst_9 = arith.constant dense<0.000000e+00> : vector<2x32xf32>
    %7 = tpu.matmul %1, %6, %cst_9 {dimension_numbers = #tpu.dot_dimension_numbers<[1], [0], [0], [1], [0, 0, 1, 1], [], []>} : vector<2x32xf32>, vector<32x32xf32>, vector<2x32xf32> -> vector<2x32xf32>
    %8 = arith.addf %4, %7 : vector<2x32xf32>
    %c0_10 = arith.constant 0 : index
    %c0_11 = arith.constant 0 : index
    %c0_12 = arith.constant 0 : index
    %9 = vector.load %arg5[%c0_10, %c0_11, %c0_12] : memref<3x1x32xf32, #tpu.memory_space<vmem>>, vector<1x1x32xf32>
    %10 = vector.shape_cast %9 : vector<1x1x32xf32> to vector<1x32xf32>
    %11 = vector.broadcast %10 : vector<1x32xf32> to vector<2x32xf32>
    %12 = arith.addf %8, %11 : vector<2x32xf32>
    %13 = math.absf %12 : vector<2x32xf32>
    %cst_13 = arith.constant 0.000000e+00 : f32
    %14 = vector.broadcast %cst_13 : f32 to vector<2x32xf32>
    %15 = arith.subf %14, %13 : vector<2x32xf32>
    %16 = math.exp %15 : vector<2x32xf32>
    %cst_14 = arith.constant 1.000000e+00 : f32
    %17 = vector.broadcast %cst_14 : f32 to vector<2x32xf32>
    %18 = arith.addf %17, %16 : vector<2x32xf32>
    %cst_15 = arith.constant 1.000000e+00 : f32
    %19 = vector.broadcast %cst_15 : f32 to vector<2x32xf32>
    %20 = arith.divf %19, %18 : vector<2x32xf32>
    %cst_16 = arith.constant 0.000000e+00 : f32
    %21 = vector.broadcast %cst_16 : f32 to vector<2x32xf32>
    %22 = arith.cmpf oge, %12, %21 : vector<2x32xf32>
    %23 = arith.mulf %16, %20 : vector<2x32xf32>
    %24 = arith.select %22, %20, %23 : vector<2x32xi1>, vector<2x32xf32>
    %c1 = arith.constant 1 : index
    %c0_17 = arith.constant 0 : index
    %c0_18 = arith.constant 0 : index
    %25 = vector.load %arg3[%c1, %c0_17, %c0_18] : memref<3x32x32xf32, #tpu.memory_space<vmem>>, vector<1x32x32xf32>
    %26 = vector.shape_cast %25 : vector<1x32x32xf32> to vector<32x32xf32>
    %cst_19 = arith.constant dense<0.000000e+00> : vector<2x32xf32>
    %27 = tpu.matmul %0, %26, %cst_19 {dimension_numbers = #tpu.dot_dimension_numbers<[1], [0], [0], [1], [0, 0, 1, 1], [], []>} : vector<2x32xf32>, vector<32x32xf32>, vector<2x32xf32> -> vector<2x32xf32>
    %c1_20 = arith.constant 1 : index
    %c0_21 = arith.constant 0 : index
    %c0_22 = arith.constant 0 : index
    %28 = vector.load %arg4[%c1_20, %c0_21, %c0_22] : memref<3x32x32xf32, #tpu.memory_space<vmem>>, vector<1x32x32xf32>
    %29 = vector.shape_cast %28 : vector<1x32x32xf32> to vector<32x32xf32>
    %cst_23 = arith.constant dense<0.000000e+00> : vector<2x32xf32>
    %30 = tpu.matmul %1, %29, %cst_23 {dimension_numbers = #tpu.dot_dimension_numbers<[1], [0], [0], [1], [0, 0, 1, 1], [], []>} : vector<2x32xf32>, vector<32x32xf32>, vector<2x32xf32> -> vector<2x32xf32>
    %31 = arith.addf %27, %30 : vector<2x32xf32>
    %c1_24 = arith.constant 1 : index
    %c0_25 = arith.constant 0 : index
    %c0_26 = arith.constant 0 : index
    %32 = vector.load %arg5[%c1_24, %c0_25, %c0_26] : memref<3x1x32xf32, #tpu.memory_space<vmem>>, vector<1x1x32xf32>
    %33 = vector.shape_cast %32 : vector<1x1x32xf32> to vector<1x32xf32>
    %34 = vector.broadcast %33 : vector<1x32xf32> to vector<2x32xf32>
    %35 = arith.addf %31, %34 : vector<2x32xf32>
    %36 = math.absf %35 : vector<2x32xf32>
    %cst_27 = arith.constant 0.000000e+00 : f32
    %37 = vector.broadcast %cst_27 : f32 to vector<2x32xf32>
    %38 = arith.subf %37, %36 : vector<2x32xf32>
    %39 = math.exp %38 : vector<2x32xf32>
    %cst_28 = arith.constant 1.000000e+00 : f32
    %40 = vector.broadcast %cst_28 : f32 to vector<2x32xf32>
    %41 = arith.addf %40, %39 : vector<2x32xf32>
    %cst_29 = arith.constant 1.000000e+00 : f32
    %42 = vector.broadcast %cst_29 : f32 to vector<2x32xf32>
    %43 = arith.divf %42, %41 : vector<2x32xf32>
    %cst_30 = arith.constant 0.000000e+00 : f32
    %44 = vector.broadcast %cst_30 : f32 to vector<2x32xf32>
    %45 = arith.cmpf oge, %35, %44 : vector<2x32xf32>
    %46 = arith.mulf %39, %43 : vector<2x32xf32>
    %47 = arith.select %45, %43, %46 : vector<2x32xi1>, vector<2x32xf32>
    %c2 = arith.constant 2 : index
    %c0_31 = arith.constant 0 : index
    %c0_32 = arith.constant 0 : index
    %48 = vector.load %arg4[%c2, %c0_31, %c0_32] : memref<3x32x32xf32, #tpu.memory_space<vmem>>, vector<1x32x32xf32>
    %49 = vector.shape_cast %48 : vector<1x32x32xf32> to vector<32x32xf32>
    %cst_33 = arith.constant dense<0.000000e+00> : vector<2x32xf32>
    %50 = tpu.matmul %1, %49, %cst_33 {dimension_numbers = #tpu.dot_dimension_numbers<[1], [0], [0], [1], [0, 0, 1, 1], [], []>} : vector<2x32xf32>, vector<32x32xf32>, vector<2x32xf32> -> vector<2x32xf32>
    %c0_34 = arith.constant 0 : index
    %c0_35 = arith.constant 0 : index
    %51 = vector.load %arg6[%c0_34, %c0_35] : memref<1x32xf32, #tpu.memory_space<vmem>>, vector<1x32xf32>
    %52 = vector.broadcast %51 : vector<1x32xf32> to vector<2x32xf32>
    %53 = arith.addf %50, %52 : vector<2x32xf32>
    %c2_36 = arith.constant 2 : index
    %c0_37 = arith.constant 0 : index
    %c0_38 = arith.constant 0 : index
    %54 = vector.load %arg3[%c2_36, %c0_37, %c0_38] : memref<3x32x32xf32, #tpu.memory_space<vmem>>, vector<1x32x32xf32>
    %55 = vector.shape_cast %54 : vector<1x32x32xf32> to vector<32x32xf32>
    %cst_39 = arith.constant dense<0.000000e+00> : vector<2x32xf32>
    %56 = tpu.matmul %0, %55, %cst_39 {dimension_numbers = #tpu.dot_dimension_numbers<[1], [0], [0], [1], [0, 0, 1, 1], [], []>} : vector<2x32xf32>, vector<32x32xf32>, vector<2x32xf32> -> vector<2x32xf32>
    %c2_40 = arith.constant 2 : index
    %c0_41 = arith.constant 0 : index
    %c0_42 = arith.constant 0 : index
    %57 = vector.load %arg5[%c2_40, %c0_41, %c0_42] : memref<3x1x32xf32, #tpu.memory_space<vmem>>, vector<1x1x32xf32>
    %58 = vector.shape_cast %57 : vector<1x1x32xf32> to vector<1x32xf32>
    %59 = vector.broadcast %58 : vector<1x32xf32> to vector<2x32xf32>
    %60 = arith.addf %56, %59 : vector<2x32xf32>
    %61 = arith.mulf %24, %53 : vector<2x32xf32>
    %62 = arith.addf %60, %61 : vector<2x32xf32>
    %63 = math.tanh %62 : vector<2x32xf32>
    %64 = arith.subf %1, %63 : vector<2x32xf32>
    %65 = arith.mulf %47, %64 : vector<2x32xf32>
    %66 = arith.addf %63, %65 : vector<2x32xf32>
    %c0_43 = arith.constant 0 : index
    %c0_44 = arith.constant 0 : index
    %67 = vector.load %arg7[%c0_43, %c0_44] : memref<2x32xf32, #tpu.memory_space<vmem>>, vector<2x32xf32>
    tpu.vector_store %arg7[%c0_43, %c0_44], %66 {strides = array<i32>} : memref<2x32xf32, #tpu.memory_space<vmem>>, vector<2x32xf32>,
    return
  }
  func.func @transform_0(%arg0: i32) -> (i32, i32) {
    %c0_i32 = arith.constant 0 : i32
    %c0_i32_0 = arith.constant 0 : i32
    return %arg0, %c0_i32 : i32, i32
  }
  func.func @transform_1(%arg0: i32) -> (i32, i32) {
    %c0_i32 = arith.constant 0 : i32
    %c0_i32_0 = arith.constant 0 : i32
    return %arg0, %c0_i32 : i32, i32
  }
  func.func @transform_2(%arg0: i32) -> (i32, i32, i32) {
    %c0_i32 = arith.constant 0 : i32
    %c0_i32_0 = arith.constant 0 : i32
    %c0_i32_1 = arith.constant 0 : i32
    %c0_i32_2 = arith.constant 0 : i32
    return %c0_i32, %c0_i32_0, %c0_i32_1 : i32, i32, i32
  }
  func.func @transform_3(%arg0: i32) -> (i32, i32, i32) {
    %c0_i32 = arith.constant 0 : i32
    %c0_i32_0 = arith.constant 0 : i32
    %c0_i32_1 = arith.constant 0 : i32
    %c0_i32_2 = arith.constant 0 : i32
    return %c0_i32, %c0_i32_0, %c0_i32_1 : i32, i32, i32
  }
  func.func @transform_4(%arg0: i32) -> (i32, i32, i32) {
    %c0_i32 = arith.constant 0 : i32
    %c0_i32_0 = arith.constant 0 : i32
    %c0_i32_1 = arith.constant 0 : i32
    %c0_i32_2 = arith.constant 0 : i32
    return %c0_i32, %c0_i32_0, %c0_i32_1 : i32, i32, i32
  }
  func.func @transform_5(%arg0: i32) -> (i32, i32) {
    %c0_i32 = arith.constant 0 : i32
    %c0_i32_0 = arith.constant 0 : i32
    %c0_i32_1 = arith.constant 0 : i32
    return %c0_i32, %c0_i32_0 : i32, i32
  }
  func.func @transform_6(%arg0: i32) -> (i32, i32) {
    %c0_i32 = arith.constant 0 : i32
    %c0_i32_0 = arith.constant 0 : i32
    return %arg0, %c0_i32 : i32, i32
  }
}

</mosaic_0001>

<bundles_post_ra>
// kernel: tpu_custom_call.1
= control target key start
LH: loop header
LB: loop body
LE: loop exit
PB: predicated region body
PF: predicated region fallthrough
CT: control target
= control target key end

     0   :  { %6 = vsyncpa [#allocation3], 0  ;;  %s305_s0 = inlined_call_operand.hbm [shape: f32[8,128], index: 0, kind: input, shape index: {}]   ;;  %s306_s1 = inlined_call_operand.hbm [shape: f32[8,128], index: 1, kind: output, shape index: {}]  }
   0x1   :  { %7 = vsyncpa [#allocation4], 0  ;;  %s258_s6 = smov 0  }
   0x2 LB: > { %s145_s7 = sadd.s32 4294967295, %s244_s6   ;;  %p146_p0 = scmp.ge.s32.totalorder %s244_s6, 1  ;;  %s244_s6 = sphi %s258_s6, %s13_s6  }
   0x3   : > { %p60_p1 = scmp.lt.s32.totalorder %s244_s6, 3  ;;  %p270_p3 = scmp.eq.s32.totalorder %s145_s7, 0 }
   0x4   : > { %s246_s10 = smov [#allocation2]  }
   0x5   : > { %p266_p2 = pnand %p146_p0, %p60_p1  ;;  %s73_s11 = sshll.u32 %s246_s10, 4  ;;  %s74_s11 = int_to_ptr.vmem [resolvable:$true] %s73_s11 }
   0x6   : > { %s191_s12 = scalar_lea.vmem %s74_s11, 128  ;;  %p199_p10 = scmp.lt.s32.totalorder %s74_s11, %s74_s11 }
   0x7   : > { %p162_p4 = pneg %p266_p2  ;;  %p192_p7 = scmp.ne.s32.totalorder %s74_s11, %s191_s12 }
   0x8   : > { %p200_p11 = scmp.lt.s32.totalorder %s191_s12, %s191_s12 }
   0x9   : > { %p163_p5 = pnand %p270_p3, %p162_p4 }
   0xa   : > { %p201_p12 = por %p200_p11, %p199_p10 }
   0xb   : > { %p182_p6 = pneg %p163_p5 }
   0xd   : > { %p194_p8 = pnand %p192_p7, %p182_p6 }
   0xf   : > { %p195_p9 = pneg %p194_p8 }
  0x11   : > { %p202_p13 = pnand %p201_p12, %p195_p9 }
  0x13   : > { %205 = shalt.err (!%p202_p13)
}
  0x14   : > { %165 = dma.hbm_to_vmem [thread:$0]  (!%p163_p5), %s305_s0, 128, %s74_s11, [#allocation3]  }
  0x15   : > { %86 = sbr.rel (%p266_p2) target bundleno = 42 (0x2a), region = 24 }
  0x1a   : > { %235 = dma.done.wait (%p270_p3), [#allocation3], 128  }
  0x1b   : > { %237 = vsyncadd (%p270_p3), [#allocation3], 4294967168  ;;  %s247_s15 = smov [#allocation5]   ;;  %v96_v0 = vld [vmem:[#allocation2] sm:$0xff]  ;;  %p287_p0 = scmp.eq.s32.totalorder %s145_s7, 1 }
  0x1c   : > { %s106_s16 = sshll.u32 %s247_s15, 4  ;;  %v97_v1 = vadd.f32 1.0, %v96_v0  ;;  %s107_s16 = int_to_ptr.vmem [resolvable:$true] %s106_s16 }
  0x1d   : > { %s206_s18 = scalar_lea.vmem %s107_s16, 128  ;;  %p213_p5 = scmp.lt.s32.totalorder %s107_s16, %s107_s16 }
  0x1e   : > { %98 = vst [vmem:[#allocation5] sm:$0xff] %v97_v1  ;;  %p207_p1 = scmp.ne.s32.totalorder %s107_s16, %s206_s18  ;;  %p214_p6 = scmp.lt.s32.totalorder %s206_s18, %s206_s18 }
  0x20   : > { %p208_p2 = pnand %p207_p1, %p287_p0  ;;  %p215_p7 = por %p214_p6, %p213_p5 }
  0x22   : > { %p209_p4 = pneg %p208_p2 }
  0x24   : > { %p216_p3 = pnand %p215_p7, %p209_p4 }
  0x26   : > { %219 = shalt.err (!%p216_p3)
}
  0x27   : > { %159 = dma.vmem_to_hbm [thread:$0]  (%p287_p0), %s107_s16, 128, %s306_s1, [#allocation4]  }
  0x28   : > { %239 = dma.done.wait (%p287_p0), [#allocation4], 128  }
  0x29   : > { %241 = vsyncadd (%p287_p0), [#allocation4], 4294967168 }
  0x2a PF: > { %s13_s6 = sadd.s32 1, %s244_s6  }
  0x2b   : > { %p10_p8 = scmp.ge.s32.totalorder %s13_s6, 4  }
  0x2d   :  { %12 = sbr.rel (!%p10_p8) target bundleno = 2 (0x2), region = 53 }
  0x32   :  { %119 = vsyncpa [#allocation3], 1 }
  0x33   :  { %121 = vsyncpa [#allocation3 + $0x1], 1 }
  0x34   :  { %122 = vsyncpa [#allocation4], 1 }
  0x35   :  { %124 = vsyncpa [#allocation4 + $0x1], 1 }

// kernel: tpu_custom_call.1
= control target key start
LH: loop header
LB: loop body
LE: loop exit
PB: predicated region body
PF: predicated region fallthrough
CT: control target
= control target key end

     0   :  { %11 = vsyncpa [#allocation3], 0  ;;  %s963_s0 = inlined_call_operand.vmem [shape: f32[2,32], index: 0, kind: input, shape index: {}]   ;;  %s964_s1 = inlined_call_operand.hbm [shape: f32[2,32], index: 1, kind: input, shape index: {}, may-alias: {1,6}]   ;;  %s965_s2 = inlined_call_operand.hbm [shape: f32[3,32,32], index: 2, kind: input, shape index: {}]   ;;  %s966_s3 = inlined_call_operand.hbm [shape: f32[3,32,32], index: 3, kind: input, shape index: {}]   ;;  %s967_s4 = inlined_call_operand.vmem [shape: f32[3,1,32], index: 4, kind: input, shape index: {}]   ;;  %s968_s5 = inlined_call_operand.hbm [shape: f32[1,32], index: 5, kind: input, shape index: {}]   ;;  %s969_s6 = inlined_call_operand.hbm [shape: f32[2,32], index: 6, kind: output, shape index: {}, may-alias: {1,6}]  }
   0x1   :  { %12 = vsyncpa [#allocation6], 0 }
   0x2   :  { %13 = vsyncpa [#allocation9], 0 }
   0x3   :  { %14 = vsyncpa [#allocation4], 0  ;;  %s844_s21 = smov [#allocation5]  }
   0x4   :  { %s32_s22 = sshll.u32 %s844_s21, 4  ;;  %s33_s22 = int_to_ptr.vmem [resolvable:$true] %s32_s22 }
   0x5   :  { %s744_s23 = scalar_lea.vmem %s33_s22, 1536  ;;  %p749_p1 = scmp.lt.s32.totalorder %s33_s22, %s33_s22 }
   0x6   :  { %p745_p0 = scmp.ne.s32.totalorder %s33_s22, %s744_s23  ;;  %p750_p2 = scmp.lt.s32.totalorder %s744_s23, %s744_s23 }
   0x8   :  { %p751_p3 = por %p750_p2, %p749_p1 }
   0xa   :  { %p752_p4 = pnand %p751_p3, %p745_p0 }
   0xc   :  { %755 = shalt.err (!%p752_p4)
}
   0xd   :  { %s845_s24 = smov 128   ;;  %s846_s25 = smov 8  }
   0xe   :  { %38 = dma.hbm_to_vmem [thread:$0]  %s965_s2, 1536, %s33_s22, [#allocation6], %s845_s24, %s845_s24, %s846_s25  }
   0xf   :  { %s847_s28 = smov [#allocation2]   ;;  %s848_s30 = smov [#allocation7]  }
  0x10   :  { %s23_s29 = sshll.u32 %s847_s28, 4  ;;  %s44_s7 = sshll.u32 %s848_s30, 4  ;;  %s24_s29 = int_to_ptr.vmem [resolvable:$true] %s23_s29  ;;  %s45_s7 = int_to_ptr.vmem [resolvable:$true] %s44_s7 }
  0x11   :  { %s764_s8 = scalar_lea.vmem %s24_s29, 32  ;;  %p769_p6 = scmp.lt.s32.totalorder %s24_s29, %s24_s29 }
  0x12   :  { %p765_p5 = scmp.ne.s32.totalorder %s24_s29, %s764_s8  ;;  %p770_p7 = scmp.lt.s32.totalorder %s764_s8, %s764_s8 }
  0x14   :  { %p771_p8 = por %p770_p7, %p769_p6 }
  0x16   :  { %p772_p9 = pnand %p771_p8, %p765_p5 }
  0x18   :  { %775 = shalt.err (!%p772_p9)
}
  0x19   :  { %26 = dma.hbm_to_vmem [thread:$0]  %s964_s1, 32, %s24_s29, [#allocation3]  }
  0x1a   :  { %s784_s11 = scalar_lea.vmem %s45_s7, 1536  ;;  %p789_p11 = scmp.lt.s32.totalorder %s45_s7, %s45_s7 }
  0x1b   :  { %p785_p10 = scmp.ne.s32.totalorder %s45_s7, %s784_s11  ;;  %p790_p12 = scmp.lt.s32.totalorder %s784_s11, %s784_s11 }
  0x1d   :  { %p791_p13 = por %p790_p12, %p789_p11 }
  0x1f   :  { %p792_p0 = pnand %p791_p13, %p785_p10 }
  0x21   :  { %795 = shalt.err (!%p792_p0)
}
  0x22   :  { %50 = dma.hbm_to_vmem [thread:$0]  %s966_s3, 1536, %s45_s7, [#allocation6], %s845_s24, %s845_s24, %s846_s25  }
  0x23   :  { %s849_s13 = smov [#allocation8]  }
  0x24   :  { %s59_s14 = sshll.u32 %s849_s13, 4  ;;  %s60_s14 = int_to_ptr.vmem [resolvable:$true] %s59_s14 }
  0x25   :  { %s804_s15 = scalar_lea.vmem %s60_s14, 16  ;;  %s808_s16 = scalar_lea.vmem %s60_s14, 32 }
  0x26   :  { %p805_p1 = scmp.ne.s32.totalorder %s60_s14, %s804_s15  ;;  %p809_p2 = scmp.lt.s32.totalorder %s60_s14, %s60_s14 }
  0x27   :  { %p810_p3 = scmp.lt.s32.totalorder %s808_s16, %s804_s15 }
  0x29   :  { %p811_p4 = por %p810_p3, %p809_p2 }
  0x2b   :  { %p812_p5 = pnand %p811_p4, %p805_p1 }
  0x2d   :  { %815 = shalt.err (!%p812_p5)
}
  0x2e   :  { %62 = dma.hbm_to_vmem [thread:$0]  %s968_s5, 16, %s60_s14, [#allocation9]  }
  0x2f   :  { %836 = dma.done.wait [#allocation3], 32  }
  0x30   :  { %837 = vsyncadd [#allocation3], 4294967264 }
  0x31   :  { %838 = dma.done.wait [#allocation6], 3072  }
  0x32   :  { %839 = vsyncadd [#allocation6], 4294964224 }
  0x33   :  { %840 = dma.done.wait [#allocation9], 16  }
  0x34   :  { %841 = vsyncadd [#allocation9], 4294967280  ;;  %v850_v0 = vmov 0.0   ;;  %vm851_vm0 = vmmov 0   ;;  %v84_v1 = vld [vmem:[#allocation7 + $0x18] sm:$0xff]  ;;  %v83_v3 = vld [vmem:[#allocation7 + $0x10] sm:$0xff] }
  0x35   :  { %651 = vmatprep.subr.mxu0 %v850_v0  ;;  %662 = vmatprep.subr.mxu1 %v850_v0  ;;  %v80_v2 = vld [vmem:[#allocation5 + $0x18] sm:$0xff]  ;;  %v79_v4 = vld [vmem:[#allocation5 + $0x10] sm:$0xff]  ;;  %v82_v5 = vld [vmem:[#allocation7 + $0x8] sm:$0xff]  ;;  %vm85_vm1 = vcmask 261120   ;;  %s852_s23 = smov [#allocation10]   ;;  %vm590_vm4 = vcmask 254976  }
  0x36   :  { %659 = vmatprep.mubr.msk.f32.mxu0 %vm851_vm0, %v850_v0  ;;  %670 = vmatprep.mubr.msk.f32.mxu1 %vm851_vm0, %v850_v0  ;;  %v78_v6 = vld [vmem:[#allocation5 + $0x8] sm:$0xff]  ;;  %v81_v7 = vld [vmem:[#allocation7] sm:$0xff]  ;;  %v910_v9 = vld [vmem:[#allocation2] sm:$0x3]  ;;  %s598_s24 = sshll.u32 %s852_s23, 4  ;;  %s599_s24 = int_to_ptr.vmem [resolvable:$true] %s598_s24 }
  0x37   :  { %652 = vmatpush3.msra.mxu0 %v84_v1  ;;  %663 = vmatpush3.msra.mxu1 %v80_v2  ;;  %v77_v8 = vld [vmem:[#allocation5] sm:$0xff]  ;;  %v75_v10 = vld [vmem:[%s963_s0] sm:$0x3]  ;;  %v258_v13 = vld [vmem:[#allocation7 + $0x30] sm:$0xff]  ;;  %p821_p7 = scmp.lt.s32.totalorder %s599_s24, %s599_s24 }
  0x38   :  { %653 = vmatprep.subr.mxu0 %v850_v0  ;;  %664 = vmatprep.subr.mxu1 %v850_v0  ;;  %v259_v11 = vld [vmem:[#allocation7 + $0x38] sm:$0xff]  ;;  %v253_v14 = vld [vmem:[#allocation5 + $0x30] sm:$0xff]  ;;  %v257_v15 = vld [vmem:[#allocation7 + $0x28] sm:$0xff] }
  0x39   :  { %654 = vmatpush3.msra.mxu0 %v83_v3  ;;  %665 = vmatpush3.msra.mxu1 %v79_v4  ;;  %v254_v12 = vld [vmem:[#allocation5 + $0x38] sm:$0xff]  ;;  %v252_v16 = vld [vmem:[#allocation5 + $0x28] sm:$0xff]  ;;  %v256_v17 = vld [vmem:[#allocation7 + $0x20] sm:$0xff] }
  0x3a   :  { %655 = vmatprep.subr.mxu0 %v850_v0  ;;  %666 = vmatprep.subr.mxu1 %v850_v0  ;;  %v251_v18 = vld [vmem:[#allocation5 + $0x20] sm:$0xff]  ;;  %v423_v19 = vld [vmem:[#allocation7 + $0x58] sm:$0xff]  ;;  %v422_v21 = vld [vmem:[#allocation7 + $0x50] sm:$0xff] }
  0x3b   :  { %656 = vmatpush3.msra.mxu0 %v82_v5  ;;  %667 = vmatpush3.msra.mxu1 %v78_v6  ;;  %v505_v20 = vld [vmem:[#allocation5 + $0x58] sm:$0xff]  ;;  %v504_v22 = vld [vmem:[#allocation5 + $0x50] sm:$0xff]  ;;  %v421_v23 = vld [vmem:[#allocation7 + $0x48] sm:$0xff] }
  0x3c   :  { %657 = vmatprep.subr.mxu0 %v850_v0  ;;  %668 = vmatprep.subr.mxu1 %v850_v0  ;;  %v503_v24 = vld [vmem:[#allocation5 + $0x48] sm:$0xff]  ;;  %v420_v25 = vld [vmem:[#allocation7 + $0x40] sm:$0xff]  ;;  %v611_v29 = vld [vmem:[%s967_s4] ss:$0 sm:$0xff] }
  0x3d   :  { %658 = vmatpush3.msra.mxu0 %v81_v7  ;;  %669 = vmatpush3.msra.mxu1 %v77_v8  ;;  %v502_v26 = vld [vmem:[#allocation5 + $0x40] sm:$0xff]  ;;  %v615_v39 = vld [vmem:[%s967_s4 + $0x1] ss:$0 sm:$0xff] }
  0x3e   :  { %660 = vmatmul.mubr.msk.f32.vlgmr.msra.gmra.mxu0 %vm85_vm1, %v910_v9  ;;  %671 = vmatmul.mubr.msk.f32.vlgmr.msra.gmra.mxu1 %vm85_vm1, %v75_v10  ;;  %v616_v54 = vld [vmem:[#allocation8] ss:$0 sm:$0xff] }
  0x3f   :  { %673 = vmatprep.subr.mxu0 %v850_v0  ;;  %684 = vmatprep.subr.mxu1 %v850_v0  ;;  %v619_v56 = vld [vmem:[%s967_s4 + $0x2] ss:$0 sm:$0xff]  ;;  %s816_s4 = scalar_lea.vmem %s599_s24, 32 }
  0x40   :  { %674 = vmatpush3.msra.mxu0 %v259_v11  ;;  %685 = vmatpush3.msra.mxu1 %v254_v12  ;;  %p817_p6 = scmp.ne.s32.totalorder %s599_s24, %s816_s4  ;;  %p822_p8 = scmp.lt.s32.totalorder %s816_s4, %s816_s4 }
  0x41   :  { %675 = vmatprep.subr.mxu0 %v850_v0  ;;  %686 = vmatprep.subr.mxu1 %v850_v0 }
  0x42   :  { %676 = vmatpush3.msra.mxu0 %v258_v13  ;;  %687 = vmatpush3.msra.mxu1 %v253_v14  ;;  %p823_p9 = por %p822_p8, %p821_p7 }
  0x43   :  { %677 = vmatprep.subr.mxu0 %v850_v0  ;;  %688 = vmatprep.subr.mxu1 %v850_v0 }
  0x44   :  { %678 = vmatpush3.msra.mxu0 %v257_v15  ;;  %689 = vmatpush3.msra.mxu1 %v252_v16  ;;  %p824_p10 = pnand %p823_p9, %p817_p6 }
  0x45   :  { %679 = vmatprep.subr.mxu0 %v850_v0  ;;  %690 = vmatprep.subr.mxu1 %v850_v0 }
  0x46   :  { %680 = vmatpush3.msra.mxu0 %v256_v17  ;;  %681 = vmatprep.mubr.msk.f32.mxu0 %vm851_vm0, %v850_v0 }
  0x47   :  { %691 = vmatpush3.msra.mxu1 %v251_v18  ;;  %692 = vmatprep.mubr.msk.f32.mxu1 %vm851_vm0, %v850_v0 }
  0x48   :  { %682 = vmatmul.mubr.msk.f32.vlgmr.msra.gmra.mxu0 %vm85_vm1, %v910_v9  ;;  %693 = vmatmul.mubr.msk.f32.vlgmr.msra.gmra.mxu1 %vm85_vm1, %v75_v10 }
  0x49   :  { %695 = vmatprep.subr.mxu0 %v850_v0  ;;  %706 = vmatprep.subr.mxu1 %v850_v0 }
  0x4a   :  { %696 = vmatpush3.msra.mxu0 %v423_v19  ;;  %707 = vmatpush3.msra.mxu1 %v505_v20 }
  0x4b   :  { %697 = vmatprep.subr.mxu0 %v850_v0  ;;  %708 = vmatprep.subr.mxu1 %v850_v0 }
  0x4c   :  { %698 = vmatpush3.msra.mxu0 %v422_v21  ;;  %709 = vmatpush3.msra.mxu1 %v504_v22 }
  0x4d   :  { %699 = vmatprep.subr.mxu0 %v850_v0  ;;  %710 = vmatprep.subr.mxu1 %v850_v0 }
  0x4e   :  { %700 = vmatpush3.msra.mxu0 %v421_v23  ;;  %703 = vmatprep.mubr.msk.f32.mxu0 %vm851_vm0, %v850_v0 }
  0x4f   :  { %701 = vmatprep.subr.mxu0 %v850_v0  ;;  %711 = vmatpush3.msra.mxu1 %v503_v24 }
  0x50   :  { %702 = vmatpush3.msra.mxu0 %v420_v25  ;;  %712 = vmatprep.subr.mxu1 %v850_v0 }
  0x51   :  { %704 = vmatmul.mubr.msk.f32.vlgmr.msra.gmra.mxu0 %vm85_vm1, %v910_v9  ;;  %713 = vmatpush3.msra.mxu1 %v502_v26 }
  0x52   :  { %714 = vmatprep.mubr.msk.f32.mxu1 %vm851_vm0, %v850_v0 }
  0x53   :  { %715 = vmatmul.mubr.msk.f32.vlgmr.msra.gmra.mxu1 %vm85_vm1, %v75_v10 }
  0xfe   :  { %v155_v27 = vpop.f32.mrf.mxu0  ;;  %v228_v28 = vpop.f32.mrf.mxu1 }
  0xff   :  { %v229_v30 = vadd.f32 %v228_v28, %v155_v27 }
 0x100   :  { %v661_v31 = vpop.f32.mrf.mxu0  ;;  %v672_v32 = vpop.f32.mrf.mxu1 }
 0x101   :  { %v239_v33 = vadd.f32 %v611_v29, %v229_v30 }
 0x103   :  { %v240_v34 = vand.u32 2147483647, %v239_v33  ;;  %vm247_vm2 = vcmp.ge.f32.partialorder %v239_v33, 0.0 }
 0x105   :  { %v241_v35 = vsub.f32 0.0, %v240_v34 }
 0x107   :  { %v242_v36 = vmul.f32 1.442695, %v241_v35 }
 0x108   :  { %v326_v37 = vpop.f32.mrf.mxu0  ;;  %v396_v38 = vpop.f32.mrf.mxu1 }
 0x109   :  { %726 = vpow2.f32 %v242_v36  ;;  %v397_v40 = vadd.f32 %v396_v38, %v326_v37 }
 0x10a   :  { %v683_v41 = vpop.f32.mrf.mxu0  ;;  %v694_v42 = vpop.f32.mrf.mxu1 }
 0x10b   :  { %v408_v43 = vadd.f32 %v615_v39, %v397_v40 }
 0x10d   :  { %v409_v44 = vand.u32 2147483647, %v408_v43  ;;  %vm416_vm3 = vcmp.ge.f32.partialorder %v408_v43, 0.0 }
 0x10f   :  { %v410_v45 = vsub.f32 0.0, %v409_v44 }
 0x111   :  { %v411_v46 = vmul.f32 1.442695, %v410_v45  ;;  %v497_v47 = vpop.f32.mrf.mxu0 }
 0x112   :  { %v498_v58 = vadd.f32 %v616_v54, %v497_v47 }
 0x113   :  { %v705_v48 = vpop.f32.mrf.mxu0  ;;  %v580_v49 = vpop.f32.mrf.mxu1  ;;  %728 = vpow2.f32 %v411_v46 }
 0x114   :  { %v581_v60 = vadd.f32 %v619_v56, %v580_v49 }
 0x115   :  { %v716_v50 = vpop.f32.mrf.mxu1 }
 0x116   :  { %v727_v51 = vpop.eup %726 }
 0x117   :  { %v244_v52 = vadd.f32 1.0, %v727_v51 }
 0x119   :  { %730 = vrcp.f32 %v244_v52 }
 0x120   :  { %v729_v53 = vpop.eup %728 }
 0x121   :  { %v413_v55 = vadd.f32 1.0, %v729_v53 }
 0x123   :  { %732 = vrcp.f32 %v413_v55 }
 0x126   :  { %v731_v57 = vpop.eup %730 }
 0x127   :  { %v248_v59 = vmul.f32 %v731_v57, %v727_v51 }
 0x129   :  { %v249_v61 = vsel %vm247_vm2, %v731_v57, %v248_v59 }
 0x12a   :  { %v584_v62 = vmul.f32 %v498_v58, %v249_v61 }
 0x12c   :  { %v585_v63 = vadd.f32 %v584_v62, %v581_v60 }
 0x12e   :  { %734 = vtanh.f32 %v585_v63 }
 0x130   :  { %v733_v0 = vpop.eup %732 }
 0x131   :  { %v417_v1 = vmul.f32 %v733_v0, %v729_v53 }
 0x133   :  { %v418_v4 = vsel %vm416_vm3, %v733_v0, %v417_v1 }
 0x13b   :  { %v735_v2 = vpop.eup %734 }
 0x13c   :  { %v587_v3 = vsub.f32 %v910_v9, %v735_v2 }
 0x13e   :  { %v588_v5 = vmul.f32 %v587_v3, %v418_v4 }
 0x140   :  { %v589_v6 = vadd.f32 %v735_v2, %v588_v5 }
 0x142   :  { %591 = vst.msk [vmem:[#allocation10] sm:$0x3] %vm590_vm4, %v589_v6 }
 0x143   :  { %827 = shalt.err (!%p824_p10)
}
 0x144   :  { %601 = dma.vmem_to_hbm [thread:$0]  %s599_s24, 32, %s969_s6, [#allocation4]  }
 0x145   :  { %842 = dma.done.wait [#allocation4], 32  }
 0x146   :  { %843 = vsyncadd [#allocation4], 4294967264 }
 0x147   :  { %605 = vsyncpa [#allocation3], 1 }
 0x148   :  { %606 = vsyncpa [#allocation6], 1 }
 0x149   :  { %607 = vsyncpa [#allocation9], 1 }
 0x14a   :  { %608 = vsyncpa [#allocation4], 1 }

</bundles_post_ra>
